<compile_context>
chip_gen: v7x
topology: tpu7x:2x2x1
jax: 0.10.0
libtpu: 0.0.40
codegen_flags: <defaults>
</compile_context>

<pallas_src>
import functools

import jax
import jax.numpy as jnp
from jax.experimental import pallas as pl
from jax.experimental.pallas import tpu as pltpu


def _quant_lora_kernel(x_ref, qw_ref, wscale_ref, czs_ref, bias_ref,
                       xa_ref, rowsum_ref, b_ref, o_ref, acc_ref):
    k = pl.program_id(2)

    @pl.when(k == 0)
    def _init():
        acc_ref[...] = jnp.zeros_like(acc_ref)

    # Pure MXU accumulate on the raw quant codes (scale / zero folded out of
    # the K loop; only the int8->bf16 widen remains per weight tile).
    acc_ref[...] += jnp.dot(x_ref[...], qw_ref[...].astype(jnp.bfloat16),
                            preferred_element_type=jnp.float32)

    @pl.when(k == pl.num_programs(2) - 1)
    def _finalize():
        # Dequant applied once per output tile:
        #   (acc - rowsum * zero) * scale == x @ ((code - zero) * scale)
        base = acc_ref[...] * wscale_ref[...] - rowsum_ref[...] * czs_ref[...]
        # LoRA term: one small bf16 [tm, r_pad] x [r_pad, tn] matmul
        # (xa already carries `scaling`; r_pad is lane-dense, f32 accumulate).
        lora = jnp.dot(xa_ref[...], b_ref[...],
                       preferred_element_type=jnp.float32)
        o_ref[...] = (base + lora + bias_ref[...]).astype(o_ref.dtype)


def _pick_tile(dim, candidates):
    for c in candidates:
        if c <= dim and dim % c == 0:
            return c
    return dim  # full dimension (must then fit in VMEM)


def _vmem_limit_bytes():
    # Cap the scoped VMEM request below physical per-core capacity
    # (v5e/v6e: 128 MiB -> ~102 MiB, v7x: 64 MiB -> ~51 MiB).
    get_info = getattr(pltpu, "get_tpu_info", None)
    if get_info is not None:
        try:
            cap = getattr(get_info(), "vmem_capacity_bytes", None)
            if cap:
                return min(int(cap * 0.8), 112 * 1024 * 1024)
        except Exception:
            pass
    return 64 * 1024 * 1024


def _kernel_vmem_bytes(tm, tn, tk, r_pad):
    # Double-buffered inputs/outputs + the f32 accumulator scratch.
    in_bytes = (tm * tk * 2          # x (bf16)
                + tk * tn * 1        # qweight (int8)
                + 3 * tn * 4         # scale / zero*scale / bias (f32)
                + tm * r_pad * 2     # xa (bf16)
                + tm * 4             # rowsum (f32)
                + r_pad * tn * 2)    # lora_B (bf16)
    out_bytes = tm * tn * 4
    return 2 * (in_bytes + out_bytes) + tm * tn * 4


def _choose_tiles(m, n, k, r_pad, vmem_budget):
    tm = _pick_tile(m, (512, 256, 128, 64, 32, 16, 8))
    tn = _pick_tile(n, (2048, 1024, 512, 256, 128))
    tk = _pick_tile(k, (2048, 1024, 512, 256, 128))
    # Shrink (K first, then N, then M) until the working set fits the budget.
    while _kernel_vmem_bytes(tm, tn, tk, r_pad) > vmem_budget:
        if tk >= tn and tk > 128 and k % (tk // 2) == 0:
            tk //= 2
        elif tn > 128 and n % (tn // 2) == 0:
            tn //= 2
        elif tm > 8 and m % (tm // 2) == 0:
            tm //= 2
        else:
            break
    return tm, tn, tk


@functools.partial(jax.jit, static_argnames=("scaling", "tm", "tn", "tk"))
def quant_lora_forward(x, qweight, w_scale, w_zero, bias, lora_a, lora_b,
                       *, scaling, tm=None, tn=None, tk=None):
    """x: [batch, seq, in_features] float32.

    qweight: [in_features, out_features] int8   (quant codes, pre-transposed)
    w_scale, w_zero: [1, out_features] float32  (per-output-channel params)
    bias: [1, out_features] float32
    lora_a: [in_features, r] float32   (== lora_A.weight.T)
    lora_b: [r, out_features] float32  (== lora_B.weight.T)
    """
    batch, seq, in_features = x.shape
    out_features = qweight.shape[1]
    r = lora_a.shape[1]
    m = batch * seq
    r_pad = max(128, ((r + 127) // 128) * 128)   # lane-dense LoRA rank

    vmem_limit = _vmem_limit_bytes()
    d_tm, d_tn, d_tk = _choose_tiles(m, out_features, in_features, r_pad,
                                     int(vmem_limit * 0.8))
    tm = d_tm if tm is None else tm
    tn = d_tn if tn is None else tn
    tk = d_tk if tk is None else tk
    # TODO(synk): pad / mask ragged edge tiles instead of hard asserts.
    assert m % tm == 0 and out_features % tn == 0 and in_features % tk == 0

    x2d = x.reshape(m, in_features)
    x2d_bf16 = x2d.astype(jnp.bfloat16)

    # --- hoisted small projections (computed once, O(m*K) XLA work) --------
    # xa = x @ (scaling * A), zero-padded to r_pad and stored bf16.
    xa = jnp.dot(x2d, scaling * lora_a,
                 preferred_element_type=jnp.float32)         # [m, r] f32
    xa_pad = jnp.zeros((m, r_pad), jnp.bfloat16)
    xa_pad = xa_pad.at[:, :r].set(xa.astype(jnp.bfloat16))
    # Per-row sum of x (f32) for the zero-point correction.
    rowsum = jnp.sum(x2d, axis=1, keepdims=True)             # [m, 1] f32

    # --- weight-side preprocessing (once) -----------------------------------
    czs = (w_zero * w_scale).astype(jnp.float32)             # [1, out]
    b_pad = jnp.zeros((r_pad, out_features), jnp.bfloat16)
    b_pad = b_pad.at[:r, :].set(lora_b.astype(jnp.bfloat16))

    grid = (m // tm, out_features // tn, in_features // tk)

    out2d = pl.pallas_call(
        _quant_lora_kernel,
        out_shape=jax.ShapeDtypeStruct((m, out_features), x.dtype),
        grid_spec=pltpu.PrefetchScalarGridSpec(
            num_scalar_prefetch=0,
            grid=grid,
            in_specs=[
                pl.BlockSpec((tm, tk), lambda i, j, k: (i, k)),     # x
                pl.BlockSpec((tk, tn), lambda i, j, k: (k, j)),     # qweight
                pl.BlockSpec((1, tn), lambda i, j, k: (0, j)),      # scale
                pl.BlockSpec((1, tn), lambda i, j, k: (0, j)),      # zero*scale
                pl.BlockSpec((1, tn), lambda i, j, k: (0, j)),      # bias
                pl.BlockSpec((tm, r_pad), lambda i, j, k: (i, 0)),  # xa
                pl.BlockSpec((tm, 1), lambda i, j, k: (i, 0)),      # rowsum
                pl.BlockSpec((r_pad, tn), lambda i, j, k: (0, j)),  # lora_B
            ],
            out_specs=pl.BlockSpec((tm, tn), lambda i, j, k: (i, j)),
            scratch_shapes=[
                pltpu.VMEM((tm, tn), jnp.float32),   # f32 accumulator
            ],
        ),
        compiler_params=pltpu.CompilerParams(
            dimension_semantics=("parallel", "parallel", "arbitrary"),
            vmem_limit_bytes=vmem_limit,
        ),
    )(x2d_bf16, qweight, w_scale, czs, bias, xa_pad, rowsum, b_pad)

    # TODO(synk): emit bf16 output (halves writeback DMA) when the consumer
    # tolerates it; kept at x.dtype to match the module's result dtype.
    return out2d.reshape(batch, seq, out_features)


def reference_forward(x, qweight, w_scale, w_zero, bias, lora_a, lora_b,
                      *, scaling):
    w = (qweight.astype(jnp.float32) - w_zero) * w_scale
    base = jnp.einsum("bsk,kn->bsn", x, w) + bias[0]
    lora = jnp.einsum("bsk,kr,rn->bsn", x, lora_a, lora_b)
    return base + scaling * lora


if __name__ == "__main__":
    # Small, deterministic problem (grid = (1, 2, 2) so the accumulator,
    # finalize and N-tiling paths are actually exercised).
    batch, seq = 2, 8
    in_features, out_features, r = 256, 512, 16
    lora_alpha = 32
    scaling = lora_alpha / r

    key = jax.random.PRNGKey(0)
    k_x, k_qw, k_sc, k_z, k_b, k_a, k_lb = jax.random.split(key, 7)

    x = jax.random.normal(k_x, (batch, seq, in_features), dtype=jnp.float32)

    # Synthetic "GPTQ" weights: int8 codes + per-output-channel scale/zero.
    qweight = jax.random.randint(k_qw, (in_features, out_features), -8, 8,
                                 dtype=jnp.int32).astype(jnp.int8)
    w_scale = (0.05 + 0.01 * jax.random.uniform(
        k_sc, (1, out_features), dtype=jnp.float32))
    w_zero = jax.random.randint(k_z, (1, out_features), 0, 4,
                                dtype=jnp.int32).astype(jnp.float32)
    bias = 0.1 * jax.random.normal(k_b, (1, out_features), dtype=jnp.float32)

    # LoRA weights (stored transposed). NOTE: PEFT inits lora_B to zeros; we
    # use small random values here so the LoRA path is actually exercised.
    lora_a = (jax.random.normal(k_a, (in_features, r), dtype=jnp.float32)
              / jnp.sqrt(in_features))
    lora_b = 0.02 * jax.random.normal(k_lb, (r, out_features),
                                      dtype=jnp.float32)

    out = quant_lora_forward(x, qweight, w_scale, w_zero, bias, lora_a,
                             lora_b, scaling=scaling, tk=128, tn=256)
    out = jax.block_until_ready(out)

    ref = reference_forward(x, qweight, w_scale, w_zero, bias, lora_a,
                            lora_b, scaling=scaling)
    assert out.shape == (batch, seq, out_features)
    # bf16 MXU operands (f32 accumulation) vs the exact f32 reference.
    assert jnp.allclose(out, ref, atol=5e-2, rtol=5e-2)

    print("KERNEL_OK")
</pallas_src>

<mosaic_0001>
module attributes {stable_mosaic.version = 11 : i64} {
  func.func @_quant_lora_kernel(%arg0: i32, %arg1: i32, %arg2: i32, %arg3: memref<16x128xbf16, #tpu.memory_space<vmem>>, %arg4: memref<128x256xi8, #tpu.memory_space<vmem>>, %arg5: memref<1x256xf32, #tpu.memory_space<vmem>>, %arg6: memref<1x256xf32, #tpu.memory_space<vmem>>, %arg7: memref<1x256xf32, #tpu.memory_space<vmem>>, %arg8: memref<16x128xbf16, #tpu.memory_space<vmem>>, %arg9: memref<16x1xf32, #tpu.memory_space<vmem>>, %arg10: memref<128x256xbf16, #tpu.memory_space<vmem>>, %arg11: memref<16x256xf32, #tpu.memory_space<vmem>>, %arg12: memref<16x256xf32, #tpu.memory_space<vmem>>) attributes {dimension_semantics = [#tpu.dimension_semantics<parallel>, #tpu.dimension_semantics<parallel>, #tpu.dimension_semantics<arbitrary>], iteration_bounds = array<i64: 1, 2, 2>, scalar_prefetch = 0 : i64, scratch_operands = 1 : i64, tpu.core_type = #tpu.core_type<tc>, window_params = [{transform_indices = @transform_0, window_bounds = array<i64: 16, 128>}, {transform_indices = @transform_1, window_bounds = array<i64: 128, 256>}, {transform_indices = @transform_2, window_bounds = array<i64: 1, 256>}, {transform_indices = @transform_3, window_bounds = array<i64: 1, 256>}, {transform_indices = @transform_4, window_bounds = array<i64: 1, 256>}, {transform_indices = @transform_5, window_bounds = array<i64: 16, 128>}, {transform_indices = @transform_6, window_bounds = array<i64: 16, 1>}, {transform_indices = @transform_7, window_bounds = array<i64: 128, 256>}, {transform_indices = @transform_8, window_bounds = array<i64: 16, 256>}]} {
    %c0_i32 = arith.constant 0 : i32
    %0 = arith.cmpi eq, %arg2, %c0_i32 : i32
    %1 = arith.extui %0 : i1 to i32
    %c0_i32_0 = arith.constant 0 : i32
    %2 = arith.cmpi ne, %1, %c0_i32_0 : i32
    scf.if %2 {
      %cst_9 = arith.constant 0.000000e+00 : f32
      %13 = vector.broadcast %cst_9 : f32 to vector<16x256xf32>
      %c0_10 = arith.constant 0 : index
      %c0_11 = arith.constant 0 : index
      %14 = vector.load %arg12[%c0_10, %c0_11] : memref<16x256xf32, #tpu.memory_space<vmem>>, vector<16x256xf32>
      tpu.vector_store %arg12[%c0_10, %c0_11], %13 {strides = array<i32>} : memref<16x256xf32, #tpu.memory_space<vmem>>, vector<16x256xf32>,
    } else {
    }
    %c0 = arith.constant 0 : index
    %c0_1 = arith.constant 0 : index
    %3 = vector.load %arg12[%c0, %c0_1] : memref<16x256xf32, #tpu.memory_space<vmem>>, vector<16x256xf32>
    %c0_2 = arith.constant 0 : index
    %c0_3 = arith.constant 0 : index
    %4 = vector.load %arg3[%c0_2, %c0_3] : memref<16x128xbf16, #tpu.memory_space<vmem>>, vector<16x128xbf16>
    %c0_4 = arith.constant 0 : index
    %c0_5 = arith.constant 0 : index
    %5 = vector.load %arg4[%c0_4, %c0_5] : memref<128x256xi8, #tpu.memory_space<vmem>>, vector<128x256xi8>
    %6 = arith.sitofp %5 : vector<128x256xi8> to vector<128x256xbf16>
    %cst = arith.constant dense<0.000000e+00> : vector<16x256xf32>
    %7 = tpu.matmul %4, %6, %cst {dimension_numbers = #tpu.dot_dimension_numbers<[1], [0], [0], [1], [0, 0, 1, 1], [], []>} : vector<16x128xbf16>, vector<128x256xbf16>, vector<16x256xf32> -> vector<16x256xf32>
    %8 = arith.addf %3, %7 : vector<16x256xf32>
    %c0_6 = arith.constant 0 : index
    %c0_7 = arith.constant 0 : index
    %9 = vector.load %arg12[%c0_6, %c0_7] : memref<16x256xf32, #tpu.memory_space<vmem>>, vector<16x256xf32>
    tpu.vector_store %arg12[%c0_6, %c0_7], %8 {strides = array<i32>} : memref<16x256xf32, #tpu.memory_space<vmem>>, vector<16x256xf32>,
    %c1_i32 = arith.constant 1 : i32
    %10 = arith.cmpi eq, %arg2, %c1_i32 : i32
    %11 = arith.extui %10 : i1 to i32
    %c0_i32_8 = arith.constant 0 : i32
    %12 = arith.cmpi ne, %11, %c0_i32_8 : i32
    scf.if %12 {
      %c0_9 = arith.constant 0 : index
      %c0_10 = arith.constant 0 : index
      %13 = vector.load %arg12[%c0_9, %c0_10] : memref<16x256xf32, #tpu.memory_space<vmem>>, vector<16x256xf32>
      %c0_11 = arith.constant 0 : index
      %c0_12 = arith.constant 0 : index
      %14 = vector.load %arg5[%c0_11, %c0_12] : memref<1x256xf32, #tpu.memory_space<vmem>>, vector<1x256xf32>
      %15 = vector.broadcast %14 : vector<1x256xf32> to vector<16x256xf32>
      %16 = arith.mulf %13, %15 : vector<16x256xf32>
      %c0_13 = arith.constant 0 : index
      %c0_14 = arith.constant 0 : index
      %17 = vector.load %arg9[%c0_13, %c0_14] : memref<16x1xf32, #tpu.memory_space<vmem>>, vector<16x1xf32>
      %c0_15 = arith.constant 0 : index
      %c0_16 = arith.constant 0 : index
      %18 = vector.load %arg6[%c0_15, %c0_16] : memref<1x256xf32, #tpu.memory_space<vmem>>, vector<1x256xf32>
      %19 = vector.broadcast %17 : vector<16x1xf32> to vector<16x256xf32>
      %20 = vector.broadcast %18 : vector<1x256xf32> to vector<16x256xf32>
      %21 = arith.mulf %19, %20 : vector<16x256xf32>
      %22 = arith.subf %16, %21 : vector<16x256xf32>
      %c0_17 = arith.constant 0 : index
      %c0_18 = arith.constant 0 : index
      %23 = vector.load %arg8[%c0_17, %c0_18] : memref<16x128xbf16, #tpu.memory_space<vmem>>, vector<16x128xbf16>
      %c0_19 = arith.constant 0 : index
      %c0_20 = arith.constant 0 : index
      %24 = vector.load %arg10[%c0_19, %c0_20] : memref<128x256xbf16, #tpu.memory_space<vmem>>, vector<128x256xbf16>
      %cst_21 = arith.constant dense<0.000000e+00> : vector<16x256xf32>
      %25 = tpu.matmul %23, %24, %cst_21 {dimension_numbers = #tpu.dot_dimension_numbers<[1], [0], [0], [1], [0, 0, 1, 1], [], []>} : vector<16x128xbf16>, vector<128x256xbf16>, vector<16x256xf32> -> vector<16x256xf32>
      %26 = arith.addf %22, %25 : vector<16x256xf32>
      %c0_22 = arith.constant 0 : index
      %c0_23 = arith.constant 0 : index
      %27 = vector.load %arg7[%c0_22, %c0_23] : memref<1x256xf32, #tpu.memory_space<vmem>>, vector<1x256xf32>
      %28 = vector.broadcast %27 : vector<1x256xf32> to vector<16x256xf32>
      %29 = arith.addf %26, %28 : vector<16x256xf32>
      %c0_24 = arith.constant 0 : index
      %c0_25 = arith.constant 0 : index
      %30 = vector.load %arg11[%c0_24, %c0_25] : memref<16x256xf32, #tpu.memory_space<vmem>>, vector<16x256xf32>
      tpu.vector_store %arg11[%c0_24, %c0_25], %29 {strides = array<i32>} : memref<16x256xf32, #tpu.memory_space<vmem>>, vector<16x256xf32>,
    } else {
    }
    return
  }
  func.func @transform_0(%arg0: i32, %arg1: i32, %arg2: i32) -> (i32, i32) {
    %c0_i32 = arith.constant 0 : i32
    return %arg0, %arg2 : i32, i32
  }
  func.func @transform_1(%arg0: i32, %arg1: i32, %arg2: i32) -> (i32, i32) {
    %c0_i32 = arith.constant 0 : i32
    return %arg2, %arg1 : i32, i32
  }
  func.func @transform_2(%arg0: i32, %arg1: i32, %arg2: i32) -> (i32, i32) {
    %c0_i32 = arith.constant 0 : i32
    %c0_i32_0 = arith.constant 0 : i32
    return %c0_i32, %arg1 : i32, i32
  }
  func.func @transform_3(%arg0: i32, %arg1: i32, %arg2: i32) -> (i32, i32) {
    %c0_i32 = arith.constant 0 : i32
    %c0_i32_0 = arith.constant 0 : i32
    return %c0_i32, %arg1 : i32, i32
  }
  func.func @transform_4(%arg0: i32, %arg1: i32, %arg2: i32) -> (i32, i32) {
    %c0_i32 = arith.constant 0 : i32
    %c0_i32_0 = arith.constant 0 : i32
    return %c0_i32, %arg1 : i32, i32
  }
  func.func @transform_5(%arg0: i32, %arg1: i32, %arg2: i32) -> (i32, i32) {
    %c0_i32 = arith.constant 0 : i32
    %c0_i32_0 = arith.constant 0 : i32
    return %arg0, %c0_i32 : i32, i32
  }
  func.func @transform_6(%arg0: i32, %arg1: i32, %arg2: i32) -> (i32, i32) {
    %c0_i32 = arith.constant 0 : i32
    %c0_i32_0 = arith.constant 0 : i32
    return %arg0, %c0_i32 : i32, i32
  }
  func.func @transform_7(%arg0: i32, %arg1: i32, %arg2: i32) -> (i32, i32) {
    %c0_i32 = arith.constant 0 : i32
    %c0_i32_0 = arith.constant 0 : i32
    return %c0_i32, %arg1 : i32, i32
  }
  func.func @transform_8(%arg0: i32, %arg1: i32, %arg2: i32) -> (i32, i32) {
    %c0_i32 = arith.constant 0 : i32
    return %arg0, %arg1 : i32, i32
  }
}

</mosaic_0001>

<bundles_post_ra>
// kernel: mul.5
= control target key start
LH: loop header
LB: loop body
LE: loop exit
PB: predicated region body
PF: predicated region fallthrough
CT: control target
= control target key end

     0   :  { %3 = vsyncpa [#allocation1], 0  ;;  %s168_s0 = inlined_call_operand.hbm [shape: f32[1,512], index: 0, kind: input, shape index: {}]   ;;  %s169_s1 = inlined_call_operand.vmem [shape: f32[1,512], index: 1, kind: input, shape index: {}]   ;;  %s170_s2 = inlined_call_operand.hbm [shape: f32[1,512], index: 2, kind: output, shape index: {}]  }
   0x1   :  { %4 = vsyncpa [#allocation2], 0  ;;  %s115_s9 = smov [#allocation0]   ;;  %s67_s13 = scalar_lea.hbm %s168_s0, 64 }
   0x2   :  { %s9_s10 = sshll.u32 %s115_s9, 4  ;;  %p68_p0 = scmp.ne.s32.totalorder %s168_s0, %s67_s13  ;;  %s10_s10 = int_to_ptr.vmem [resolvable:$true] %s9_s10 }
   0x3   :  { %p71_p1 = scmp.lt.u32.totalorder %s67_s13, %s168_s0 }
   0x5   :  { %p73_p2 = pnand %p71_p1, %p68_p0 }
   0x7   :  { %76 = shalt.err (!%p73_p2)
}
   0x8   :  { %s77_s18 = scalar_lea.vmem %s10_s10, 64  ;;  %p82_p4 = scmp.lt.s32.totalorder %s10_s10, %s10_s10 }
   0x9   :  { %p78_p3 = scmp.ne.s32.totalorder %s10_s10, %s77_s18  ;;  %p83_p5 = scmp.lt.s32.totalorder %s77_s18, %s77_s18 }
   0xb   :  { %p84_p6 = por %p83_p5, %p82_p4 }
   0xd   :  { %p85_p7 = pnand %p84_p6, %p78_p3 }
   0xf   :  { %88 = shalt.err (!%p85_p7)
}
  0x10   :  { %12 = dma.hbm_to_vmem [thread:$0]  %s168_s0, 64, %s10_s10, [#allocation1]  }
  0x11   :  { %111 = dma.done.wait [#allocation1], 64  }
  0x12   :  { %112 = vsyncadd [#allocation1], 4294967232  ;;  %s116_s0 = smov [#allocation3]   ;;  %v14_v0 = vld [vmem:[#allocation0] sm:$0x1] }
  0x13   :  { %s55_s21 = sshll.u32 %s116_s0, 4  ;;  %v15_v1 = vld [vmem:[%s169_s1] sm:$0x1]  ;;  %v22_v2 = vld [vmem:[#allocation0 + $0x1] sm:$0x1]  ;;  %s56_s21 = int_to_ptr.vmem [resolvable:$true] %s55_s21 }
  0x14   :  { %v18_v3 = vmul.f32 %v15_v1, %v14_v0  ;;  %v62_v4 = vld [vmem:[%s169_s1 + $0x1] sm:$0x1]  ;;  %v32_v5 = vld [vmem:[#allocation0 + $0x2] sm:$0x1]  ;;  %v42_v9 = vld [vmem:[#allocation0 + $0x3] sm:$0x1]  ;;  %p94_p9 = scmp.lt.s32.totalorder %s56_s21, %s56_s21 }
  0x15   :  { %v63_v6 = vld [vmem:[%s169_s1 + $0x2] sm:$0x1]  ;;  %v27_v7 = vmul.f32 %v62_v4, %v22_v2  ;;  %v64_v10 = vld [vmem:[%s169_s1 + $0x3] sm:$0x1]  ;;  %s89_s1 = scalar_lea.vmem %s56_s21, 64 }
  0x16   :  { %v37_v8 = vmul.f32 %v63_v6, %v32_v5  ;;  %20 = vst [vmem:[#allocation3] sm:$0x1] %v18_v3  ;;  %v47_v11 = vmul.f32 %v64_v10, %v42_v9  ;;  %p90_p8 = scmp.ne.s32.totalorder %s56_s21, %s89_s1  ;;  %p95_p10 = scmp.lt.s32.totalorder %s89_s1, %s89_s1 }
  0x17   :  { %30 = vst [vmem:[#allocation3 + $0x1] sm:$0x1] %v27_v7 }
  0x18   :  { %40 = vst [vmem:[#allocation3 + $0x2] sm:$0x1] %v37_v8  ;;  %50 = vst [vmem:[#allocation3 + $0x3] sm:$0x1] %v47_v11  ;;  %p96_p11 = por %p95_p10, %p94_p9 }
  0x1a   :  { %p97_p12 = pnand %p96_p11, %p90_p8 }
  0x1c   :  { %100 = shalt.err (!%p97_p12)
}
  0x1d   :  { %s101_s4 = scalar_lea.hbm %s170_s2, 64 }
  0x1e   :  { %p102_p13 = scmp.ne.s32.totalorder %s170_s2, %s101_s4  ;;  %p105_p0 = scmp.lt.u32.totalorder %s101_s4, %s170_s2 }
  0x20   :  { %p107_p1 = pnand %p105_p0, %p102_p13 }
  0x22   :  { %110 = shalt.err (!%p107_p1)
}
  0x23   :  { %58 = dma.vmem_to_hbm [thread:$0]  %s56_s21, 64, %s170_s2, [#allocation2]  }
  0x24   :  { %113 = dma.done.wait [#allocation2], 64  }
  0x25   :  { %114 = vsyncadd [#allocation2], 4294967232 }
  0x26   :  { %60 = vsyncpa [#allocation1], 1 }
  0x27   :  { %61 = vsyncpa [#allocation2], 1 }

// kernel: quant_lora_forward.1
= control target key start
LH: loop header
LB: loop body
LE: loop exit
PB: predicated region body
PF: predicated region fallthrough
CT: control target
= control target key end

     0   :  { %s2546_s0 = inlined_call_operand.hbm [shape: bf16[16,256], index: 0, kind: input, shape index: {}]   ;;  %s2547_s1 = inlined_call_operand.hbm [shape: s8[256,512], index: 1, kind: input, shape index: {}]   ;;  %s2548_s2 = inlined_call_operand.hbm [shape: f32[1,512], index: 2, kind: input, shape index: {}]   ;;  %s2549_s3 = inlined_call_operand.hbm [shape: f32[1,512], index: 3, kind: input, shape index: {}]   ;;  %s2550_s4 = inlined_call_operand.hbm [shape: f32[1,512], index: 4, kind: input, shape index: {}]   ;;  %s2551_s5 = inlined_call_operand.hbm [shape: bf16[16,128], index: 5, kind: input, shape index: {}]   ;;  %s2552_s6 = inlined_call_operand.hbm [shape: f32[16,1], index: 6, kind: input, shape index: {}]   ;;  %s2553_s7 = inlined_call_operand.hbm [shape: bf16[128,512], index: 7, kind: input, shape index: {}]   ;;  %s2554_s8 = inlined_call_operand.hbm [shape: f32[16,512], index: 8, kind: output, shape index: {}]  }
   0x1   :  { %2602 = sst [smem:[#allocation47_spill]] %s2546_s0 }
   0x2   :  { %2603 = sst [smem:[#allocation48_spill]] %s2547_s1 }
   0x3   :  { %2604 = sst [smem:[#allocation49_spill]] %s2548_s2 }
   0x4   :  { %2605 = sst [smem:[#allocation50_spill]] %s2549_s3 }
   0x5   :  { %2606 = sst [smem:[#allocation51_spill]] %s2550_s4 }
   0x6   :  { %2607 = sst [smem:[#allocation52_spill]] %s2551_s5 }
   0x7   :  { %2608 = sst [smem:[#allocation53_spill]] %s2552_s6 }
   0x8   :  { %2609 = sst [smem:[#allocation54_spill]] %s2553_s7 }
   0x9   :  { %2610 = sst [smem:[#allocation55_spill]] %s2554_s8 }
   0xa   :  { %13 = vsyncpa [#allocation4], 0 }
   0xb   :  { %15 = vsyncpa [#allocation4 + $0x1], 0 }
   0xc   :  { %16 = vsyncpa [#allocation7], 0 }
   0xd   :  { %18 = vsyncpa [#allocation7 + $0x1], 0 }
   0xe   :  { %19 = vsyncpa [#allocation10], 0 }
   0xf   :  { %21 = vsyncpa [#allocation10 + $0x1], 0 }
  0x10   :  { %22 = vsyncpa [#allocation13], 0 }
  0x11   :  { %23 = vsyncpa [#allocation16], 0 }
  0x12   :  { %25 = vsyncpa [#allocation16 + $0x1], 0 }
  0x13   :  { %26 = vsyncpa [#allocation5], 0 }
  0x14   :  { %28 = vsyncpa [#allocation5 + $0x1], 0  ;;  %s1914_s27 = smov 0   ;;  %s1916_s28 = smov 0  }
  0x15   :  { %s1918_s29 = smov 0   ;;  %s1920_s30 = smov 0  }
  0x16   :  { %s1922_s9 = smov 0   ;;  %s1924_s10 = smov 0  }
  0x17   :  { %s1926_s11 = smov 0   ;;  %s1928_s12 = smov 0  }
  0x18   :  { %s1930_s13 = smov 0   ;;  %s1932_s14 = smov 0  }
  0x19   :  { %s1934_s15 = smov 0   ;;  %s1936_s16 = smov 0  }
  0x1a   :  { %s1938_s17 = smov 0   ;;  %s1940_s18 = smov 0  }
  0x1b LB: > { %2611 = sst [smem:[#allocation25_spill]] %s1793_s27  ;;  %s1985_s19 = sadd.s32 4294967295, %s1845_s18   ;;  %s1845_s18 = sphi %s1940_s18, %s34_s18   ;;  %s1841_s17 = sphi %s1938_s17, %s2710_s17   ;;  %s1837_s16 = sphi %s1936_s16, %s2707_s16   ;;  %s1833_s15 = sphi %s1934_s15, %s2709_s15   ;;  %s1829_s14 = sphi %s1932_s14, %s2706_s14   ;;  %s1825_s13 = sphi %s1930_s13, %s2705_s13   ;;  %s1821_s12 = sphi %s1928_s12, %s2704_s12   ;;  %s1817_s11 = sphi %s1926_s11, %s2703_s11   ;;  %s1813_s10 = sphi %s1924_s10, %s2702_s10   ;;  %s1809_s9 = sphi %s1922_s9, %s2701_s9   ;;  %s1805_s30 = sphi %s1920_s30, %s2700_s30   ;;  %s1801_s29 = sphi %s1918_s29, %s2699_s29   ;;  %s1797_s28 = sphi %s1916_s28, %s2698_s28   ;;  %s1793_s27 = sphi %s1914_s27, %s2697_s27  }
  0x1c   : > { %2612 = sst [smem:[#allocation26_spill]] %s1797_s28  ;;  %p1167_p0 = scmp.ge.s32.totalorder %s1845_s18, 1 }
  0x1d   : > { %2613 = sst [smem:[#allocation27_spill]] %s1801_s29  ;;  %p2556_p1 = scmp.eq.s32.totalorder %s1985_s19, 0 }
  0x1e   : > { %2614 = sst [smem:[#allocation28_spill]] %s1809_s9  ;;  %p298_p2 = scmp.lt.s32.totalorder %s1845_s18, 5 }
  0x1f   : > { %2615 = sst [smem:[#allocation29_spill]] %s1813_s10  ;;  %s1847_s21 = smov [#allocation12]  }
  0x20   : > { %2616 = sst [smem:[#allocation30_spill]] %s1817_s11  ;;  %p1990_p3 = pnand %p1167_p0, %p298_p2 }
  0x21   : > { %2617 = sst [smem:[#allocation31_spill]] %s1821_s12  ;;  %s313_s22 = sshll.u32 %s1847_s21, 4  ;;  %s314_s22 = int_to_ptr.vmem [resolvable:$true] %s313_s22 }
  0x22   : > { %2618 = sst [smem:[#allocation32_spill]] %s1825_s13  ;;  %p1253_p4 = pneg %p1990_p3 }
  0x23   : > { %2619 = sst [smem:[#allocation33_spill]] %s1829_s14  ;;  %s2626_s5 = sld [smem:[#allocation52_spill]] }
  0x24   : > { %2620 = sst [smem:[#allocation34_spill]] %s1833_s15  ;;  %p1998_p5 = pnand %p1253_p4, %p2556_p1 }
  0x25   : > { %2621 = sst [smem:[#allocation35_spill]] %s1837_s16 }
  0x26   : > { %2622 = sst [smem:[#allocation36_spill]] %s1845_s18  ;;  %p2571_p7 = pneg %p1998_p5 }
  0x27   : > { %s2623_s20 = scalar_select %p1990_p3, 1, 0 }
  0x28   : > { %s2625_s23 = scalar_select %p1998_p5, 1, 0 }
  0x29   : > { %2624 = sst [smem:[#allocation37_spill]] %s2623_s20  ;;  %s1443_s26 = scalar_lea.hbm %s2626_s5, 128 }
  0x2a   : > { %p1444_p6 = scmp.ne.s32.totalorder %s2626_s5, %s1443_s26  ;;  %p1450_p10 = scmp.lt.u32.totalorder %s1443_s26, %s2626_s5 }
  0x2c   : > { %p1446_p8 = pnand %p2571_p7, %p1444_p6 }
  0x2e   : > { %p1447_p9 = pneg %p1446_p8 }
  0x30   : > { %p1452_p11 = pnand %p1450_p10, %p1447_p9 }
  0x32   : > { %1455 = shalt.err (!%p1452_p11)
}
  0x33   : > { %s1456_s24 = scalar_lea.vmem %s314_s22, 128  ;;  %p1464_p2 = scmp.lt.s32.totalorder %s314_s22, %s314_s22 }
  0x34   : > { %p1457_p12 = scmp.ne.s32.totalorder %s314_s22, %s1456_s24  ;;  %p1465_p4 = scmp.lt.s32.totalorder %s1456_s24, %s1456_s24 }
  0x36   : > { %p1459_p13 = pnand %p1457_p12, %p2571_p7  ;;  %p1466_p1 = por %p1465_p4, %p1464_p2 }
  0x38   : > { %p1460_p0 = pneg %p1459_p13 }
  0x3a   : > { %p1467_p3 = pnand %p1466_p1, %p1460_p0 }
  0x3c   : > { %1470 = shalt.err (!%p1467_p3)
}
  0x3d   : > { %s2559_s8 = smov 64   ;;  %s2560_s14 = smov 4  }
  0x3e   : > { %1256 = dma.hbm_to_vmem [thread:$0]  (!%p1998_p5), %s2626_s5, 128, %s314_s22, [#allocation13], %s2559_s8, %s2559_s8, %s2560_s14  }
  0x3f   : > { %s46_s26 = sadd.s32 1, %s1837_s16  ;;  %s49_s21 = sadd.s32 1, %s1841_s17 }
  0x40   : > { %p47_p1 = scmp.ge.s32.totalorder %s46_s26, 2  ;;  %p2573_p3 = scmp.eq.s32.totalorder %s1845_s18, 0 }
  0x41   : > { %s90_s24 = sadd.s32 1, %s1813_s10  ;;  %p97_p6 = scmp.ne.s32.totalorder %s1813_s10, %s1809_s9 }
  0x42   : > { %s2712_s26 = smov (%p47_p1, %s46_s26), 0  ;;  %s2714_s21 = smov (!%p47_p1, %s49_s21), %s1841_s17 }
  0x43   : > { %2627 = sst [smem:[#allocation38_spill]] %s2712_s26  ;;  %s2036_s20 = ssub.s32 %s1837_s16, %s2712_s26 }
  0x44   : > { %p51_p8 = scmp.ge.s32.totalorder %s2714_s21, 2  ;;  %p2043_p10 = por %p97_p6, %p2573_p3 }
  0x45   : > { %p103_p11 = scmp.ne.s32.totalorder %s1809_s9, %s1805_s30  ;;  %p2630_p12 = scmp.eq.s32.totalorder %s1985_s19, 0 }
  0x46   : > { %s2716_s21 = smov (%p51_p8, %s2714_s21), 0  ;;  %p2572_p0 = scmp.lt.s32.totalorder %s1845_s18, 4 }
  0x47   : > { %2629 = sst [smem:[#allocation39_spill]] %s2716_s21  ;;  %p2053_p13 = por %p103_p11, %p2630_p12 }
  0x48   : > { %s2060_s25 = ssub.s32 %s1841_s17, %s2716_s21  ;;  %s366_s8 = sand.u32 1, %s1845_s18  }
  0x49   : > { %s2631_s15 = scalar_select %p2053_p13, 1, 0 }
  0x4a   : > { %s87_s14 = sor.u32 %s2060_s25, %s2036_s20  ;;  %s368_s5 = sand.u32 1, %s1813_s10  }
  0x4b   : > { %2632 = sst [smem:[#allocation40_spill]] %s2631_s15  ;;  %p88_p2 = scmp.eq.s32.totalorder %s87_s14, 0 }
  0x4c   : > { %s1173_s30 = sshll.u32 %s368_s5, 6  ;;  %s1175_s26 = sshll.u32 %s1841_s17, 1 }
  0x4d   : > { %s2068_s9 = scalar_select %p88_p2, %s1813_s10, %s90_s24  }
  0x4e   : > { %s1225_s7 = sshll.u32 %s1837_s16, 4  ;;  %s370_s2 = scalar_lea.vmem [#allocation6], %s1173_s30 }
  0x4f   : > { %2633 = sst [smem:[#allocation41_spill]] %s2068_s9  ;;  %s377_s4 = sadd.s32 %s1225_s7, %s1175_s26 }
  0x50   : > { %s380_s0 = sshll.u32 %s370_s2, 4  ;;  %s1177_s15 = sshll.u32 %s377_s4, 7  ;;  %s2071_s0 = int_to_ptr.vmem [resolvable:$true] %s380_s0 }
  0x51   : > { %s2634_s1 = sld [smem:[#allocation48_spill]]  ;;  %p2082_p4 = pnand %p2572_p0, %p2043_p10 }
  0x52   : > { %s2088_s2 = scalar_lea.sflag [#allocation7], %s366_s8 }
  0x53   : > { %p1473_p6 = pneg %p2082_p4 }
  0x57   : > { %s2076_s12 = scalar_lea.hbm %s2634_s1, %s1177_s15  ;;  %s1476_s14 = scalar_lea.hbm %s2634_s1, 4096 }
  0x58   : > { %s1471_s4 = scalar_lea.hbm %s2076_s12, 1024  ;;  %p1477_p10 = scmp.lt.u32.totalorder %s2076_s12, %s2634_s1 }
  0x59   : > { %p1472_p1 = scmp.ne.s32.totalorder %s2076_s12, %s1471_s4  ;;  %p1478_p12 = scmp.lt.u32.totalorder %s1476_s14, %s1471_s4 }
  0x5a   : > { %p1480_p9 = scmp.lt.u32.totalorder %s1471_s4, %s2076_s12 }
  0x5b   : > { %p1474_p8 = pnand %p1473_p6, %p1472_p1  ;;  %p1479_p2 = por %p1478_p12, %p1477_p10 }
  0x5d   : > { %p1475_p11 = pneg %p1474_p8  ;;  %p1481_p7 = por %p1480_p9, %p1479_p2 }
  0x5f   : > { %p1482_p0 = pnand %p1481_p7, %p1475_p11 }
  0x61   : > { %1485 = shalt.err (!%p1482_p0)
}
  0x62   : > { %s1486_s24 = scalar_lea.vmem %s2071_s0, 1024  ;;  %s1850_s22 = smov [#allocation6]  }
  0x63   : > { %p1487_p1 = scmp.ne.s32.totalorder %s2071_s0, %s1486_s24  ;;  %s1491_s15 = sshll.u32 %s1850_s22, 4  ;;  %s1492_s15 = int_to_ptr.vmem [resolvable:$false] %s1491_s15 }
  0x64   : > { %s1493_s30 = scalar_lea.vmem %s1492_s15, 2048  ;;  %p1494_p13 = scmp.lt.s32.totalorder %s2071_s0, %s1492_s15 }
  0x65   : > { %p1489_p8 = pnand %p1487_p1, %p1473_p6  ;;  %p1495_p10 = scmp.lt.s32.totalorder %s1493_s30, %s1486_s24 }
  0x67   : > { %p1490_p3 = pneg %p1489_p8  ;;  %p1496_p12 = por %p1495_p10, %p1494_p13 }
  0x69   : > { %p1497_p9 = pnand %p1496_p12, %p1490_p3 }
  0x6b   : > { %1500 = shalt.err (!%p1497_p9)
}
  0x6c   : > { %s1851_s4 = smov 512   ;;  %s2575_s7 = smov 256  }
  0x6d   : > { %s1853_s11 = smov 16   ;;  %s1166_s14 = sadd.s32 4294967294, %s1845_s18  }
  0x6e   : > { %1266 = dma.hbm_to_vmem [thread:$0]  (!%p2082_p4), %s2076_s12, 1024, %s2071_s0, %s2088_s2, %s1851_s4, %s2575_s7, %s1853_s11  }
  0x6f   : > { %p114_p7 = scmp.eq.s32.totalorder %s2060_s25, 0  ;;  %s116_s26 = sadd.s32 1, %s1801_s29 }
  0x70   : > { %p123_p3 = scmp.ne.s32.totalorder %s1801_s29, %s1797_s28  ;;  %p2637_p13 = scmp.eq.s32.totalorder %s1845_s18, 0 }
  0x71   : > { %s2123_s21 = scalar_select %p114_p7, %s1801_s29, %s116_s26  }
  0x72   : > { %p125_p0 = por %p123_p3, %p2637_p13  ;;  %p129_p6 = scmp.ne.s32.totalorder %s1797_s28, %s1793_s27 }
  0x73   : > { %2636 = sst [smem:[#allocation42_spill]] %s2123_s21  ;;  %p285_p11 = scmp.eq.s32.totalorder %s1985_s19, 3 }
  0x74   : > { %p291_p2 = scmp.eq.s32.totalorder %s1166_s14, 3  ;;  %p2638_p1 = scmp.eq.s32.totalorder %s1985_s19, 0 }
  0x75   : > { %s2137_s5 = sand.u32 1, %s1801_s29   ;;  %p2139_p4 = por %p285_p11, %p123_p3 }
  0x76   : > { %p2132_p8 = por %p129_p6, %p2638_p1  ;;  %p2143_p10 = por %p291_p2, %p129_p6 }
  0x77   : > { %s2641_s0 = scalar_select %p2139_p4, 1, 0 }
  0x78   : > { %s2639_s24 = scalar_select %p2132_p8, 1, 0 }
  0x79   : > { %2642 = sst [smem:[#allocation44_spill]] %s2641_s0  ;;  %s2148_s25 = sshll.u32 %s2137_s5, 1 }
  0x7a   : > { %2640 = sst [smem:[#allocation43_spill]] %s2639_s24  ;;  %s2151_s22 = sshll.u32 %s1841_s17, 5 }
  0x7b   : > { %s2643_s12 = scalar_select %p2143_p10, 1, 0 }
  0x7c   : > { %p2645_p12 = scmp.lt.s32.totalorder %s1845_s18, 4  ;;  %s2647_s3 = sld [smem:[#allocation50_spill]] }
  0x7d   : > { %2644 = sst [smem:[#allocation45_spill]] %s2643_s12  ;;  %s413_s14 = scalar_lea.vmem [#allocation9], %s2148_s25 }
  0x7e   : > { %p2155_p9 = pnand %p2645_p12, %p125_p0  ;;  %s421_s26 = sshll.u32 %s413_s14, 4  ;;  %s2166_s26 = int_to_ptr.vmem [resolvable:$true] %s421_s26 }
  0x7f   : > { %s2170_s7 = scalar_lea.sflag [#allocation10], %s366_s8 }
  0x80   : > { %s2646_s15 = scalar_select %p2155_p9, 1, 0 }
  0x81   : > { %p2176_p3 = pneg %p2155_p9 }
  0x82   : > { %s2163_s11 = scalar_lea.hbm %s2647_s3, %s2151_s22  ;;  %s1506_s14 = scalar_lea.hbm %s2647_s3, 64 }
  0x83   : > { %s1501_s1 = scalar_lea.hbm %s2163_s11, 32  ;;  %p1507_p6 = scmp.lt.u32.totalorder %s2163_s11, %s2647_s3 }
  0x84   : > { %p1502_p7 = scmp.ne.s32.totalorder %s2163_s11, %s1501_s1  ;;  %p1508_p11 = scmp.lt.u32.totalorder %s1506_s14, %s1501_s1 }
  0x85   : > { %s2648_s9 = scalar_select %p2176_p3, 1, 0 }
  0x86   : > { %p1504_p13 = pnand %p2176_p3, %p1502_p7  ;;  %p1509_p2 = por %p1508_p11, %p1507_p6 }
  0x87   : > { %p1510_p1 = scmp.lt.u32.totalorder %s1501_s1, %s2163_s11 }
  0x88   : > { %p1505_p0 = pneg %p1504_p13 }
  0x89   : > { %p1511_p12 = por %p1510_p1, %p1509_p2 }
  0x8b   : > { %p1512_p10 = pnand %p1511_p12, %p1505_p0 }
  0x8d   : > { %1515 = shalt.err (!%p1512_p10)
}
  0x8e   : > { %s1516_s8 = scalar_lea.vmem %s2166_s26, 32  ;;  %s1854_s30 = smov [#allocation9]  }
  0x8f   : > { %p1517_p7 = scmp.ne.s32.totalorder %s2166_s26, %s1516_s8  ;;  %s1521_s4 = sshll.u32 %s1854_s30, 4  ;;  %s1522_s4 = int_to_ptr.vmem [resolvable:$false] %s1521_s4 }
  0x90   : > { %s1523_s10 = scalar_lea.vmem %s1522_s4, 64  ;;  %p1524_p8 = scmp.lt.s32.totalorder %s2166_s26, %s1522_s4 }
  0x91   : > { %p1519_p13 = pnand %p1517_p7, %p2176_p3  ;;  %p1525_p5 = scmp.lt.s32.totalorder %s1523_s10, %s1516_s8 }
  0x93   : > { %p1520_p4 = pneg %p1519_p13  ;;  %p1526_p6 = por %p1525_p5, %p1524_p8 }
  0x95   : > { %p1527_p11 = pnand %p1526_p6, %p1520_p4 }
  0x97   : > { %1530 = shalt.err (!%p1527_p11)
}
  0x98   : > { %1272 = dma.hbm_to_vmem [thread:$0]  (!%p2155_p9), %s2163_s11, 32, %s2166_s26, %s2170_s7  }
  0x99   : > { %s1187_s1 = sshll.u32 %s2137_s5, 7  ;;  %s1855_s21 = smov [#allocation14]  }
  0x9a   : > { %s329_s14 = sshll.u32 %s1855_s21, 4  ;;  %s451_s3 = scalar_lea.vmem [#allocation15], %s1187_s1  ;;  %s330_s14 = int_to_ptr.vmem [resolvable:$true] %s329_s14 }
  0x9b   : > { %s458_s30 = sshll.u32 %s451_s3, 4  ;;  %s2649_s6 = sld [smem:[#allocation53_spill]]  ;;  %s2201_s30 = int_to_ptr.vmem [resolvable:$true] %s458_s30 }
  0x9c   : > { %p2650_p8 = scmp.ne.s32.totalorder %s2625_s23, 0 }
  0x9e   : > { %p2651_p4 = pneg %p2650_p8 }
  0xa1   : > { %s1531_s10 = scalar_lea.hbm %s2649_s6, 256 }
  0xa2   : > { %p1532_p5 = scmp.ne.s32.totalorder %s2649_s6, %s1531_s10  ;;  %p1538_p2 = scmp.lt.u32.totalorder %s1531_s10, %s2649_s6 }
  0xa4   : > { %p1534_p10 = pnand %p1532_p5, %p2651_p4 }
  0xa6   : > { %p1535_p0 = pneg %p1534_p10 }
  0xa8   : > { %p1540_p1 = pnand %p1538_p2, %p1535_p0 }
  0xaa   : > { %1543 = shalt.err (!%p1540_p1)
}
  0xab   : > { %s1544_s3 = scalar_lea.vmem %s330_s14, 256  ;;  %p2652_p7 = pmov %p2651_p4 }
  0xac   : > { %p1545_p12 = scmp.ne.s32.totalorder %s330_s14, %s1544_s3  ;;  %p1552_p11 = scmp.lt.s32.totalorder %s330_s14, %s330_s14 }
  0xad   : > { %p1553_p9 = scmp.lt.s32.totalorder %s1544_s3, %s1544_s3 }
  0xae   : > { %p1547_p13 = pnand %p1545_p12, %p2652_p7 }
  0xaf   : > { %p1554_p3 = por %p1553_p9, %p1552_p11 }
  0xb0   : > { %p1548_p6 = pneg %p1547_p13 }
  0xb2   : > { %p1555_p4 = pnand %p1554_p3, %p1548_p6 }
  0xb4   : > { %1558 = shalt.err (!%p1555_p4)
}
  0xb5   : > { %s2591_s29 = smov 128   ;;  %s2653_s12 = sld [smem:[#allocation31_spill]] }
  0xb6   : > { %s2654_s1 = sld [smem:[#allocation30_spill]]  ;;  %s2590_s21 = smov 8  }
  0xb7   : > { %1259 = dma.hbm_to_vmem [thread:$0]  (!%p2650_p8), %s2649_s6, 256, %s330_s14, [#allocation13], %s2591_s29, %s2591_s29, %s2590_s21  }
  0xb8   : > { %s62_s10 = sadd.s32 1, %s1825_s13  ;;  %p2655_p9 = scmp.eq.s32.totalorder %s2036_s20, 0 }
  0xb9   : > { %s343_s26 = sand.u32 1, %s1825_s13   ;;  %s1172_s3 = sshll.u32 %s1837_s16, 6 }
  0xba   : > { %s2230_s11 = scalar_select %p2655_p9, %s1825_s13, %s62_s10  }
  0xbb   : > { %p69_p3 = scmp.ne.s32.totalorder %s1825_s13, %s2653_s12  ;;  %p2657_p10 = scmp.eq.s32.totalorder %s1845_s18, 0 }
  0xbc   : > { %2656 = sst [smem:[#allocation46_spill]] %s2230_s11  ;;  %p75_p5 = scmp.ne.s32.totalorder %s2653_s12, %s2654_s1 }
  0xbd   : > { %p71_p0 = por %p2657_p10, %p69_p3  ;;  %p2658_p2 = scmp.eq.s32.totalorder %s1985_s19, 0 }
  0xbe   : > { %s1171_s27 = sshll.u32 %s343_s26, 3  ;;  %s2660_s4 = sld [smem:[#allocation47_spill]] }
  0xbf   : > { %p2242_p1 = por %p2658_p2, %p75_p5  ;;  %s347_s20 = scalar_lea.vmem [#allocation3], %s1171_s27 }
  0xc0   : > { %s356_s12 = sshll.u32 %s347_s20, 4  ;;  %p2661_p8 = scmp.lt.s32.totalorder %s1845_s18, 4  ;;  %s2257_s12 = int_to_ptr.vmem [resolvable:$true] %s356_s12 }
  0xc1   : > { %s2659_s23 = scalar_select %p2242_p1, 1, 0 }
  0xc2   : > { %p2253_p12 = pnand %p2661_p8, %p71_p0  ;;  %s2663_s0 = sld [smem:[#allocation49_spill]] }
  0xc3   : > { %s2265_s8 = scalar_lea.sflag [#allocation4], %s343_s26 }
  0xc4   : > { %s2249_s14 = scalar_lea.hbm %s2660_s4, %s1172_s3  ;;  %p1561_p13 = pneg %p2253_p12 }
  0xc5   : > { %s1559_s29 = scalar_lea.hbm %s2249_s14, 128  ;;  %s1564_s6 = scalar_lea.hbm %s2660_s4, 256 }
  0xc6   : > { %p1560_p7 = scmp.ne.s32.totalorder %s2249_s14, %s1559_s29  ;;  %p1565_p4 = scmp.lt.u32.totalorder %s2249_s14, %s2660_s4 }
  0xc7   : > { %p1566_p9 = scmp.lt.u32.totalorder %s1564_s6, %s1559_s29  ;;  %p1568_p5 = scmp.lt.u32.totalorder %s1559_s29, %s2249_s14 }
  0xc8   : > { %s2263_s3 = scalar_lea.hbm %s2663_s0, %s2151_s22  ;;  %p1562_p6 = pnand %p1561_p13, %p1560_p7 }
  0xc9   : > { %p1567_p3 = por %p1566_p9, %p1565_p4 }
  0xca   : > { %p1563_p11 = pneg %p1562_p6 }
  0xcb   : > { %p1569_p10 = por %p1568_p5, %p1567_p3 }
  0xcd   : > { %p1570_p0 = pnand %p1569_p10, %p1563_p11 }
  0xcf   : > { %1573 = shalt.err (!%p1570_p0)
}
  0xd0   : > { %s1574_s21 = scalar_lea.vmem %s2257_s12, 128  ;;  %s1858_s26 = smov [#allocation3]  }
  0xd1   : > { %p1575_p2 = scmp.ne.s32.totalorder %s2257_s12, %s1574_s21  ;;  %s1579_s10 = sshll.u32 %s1858_s26, 4  ;;  %s1580_s10 = int_to_ptr.vmem [resolvable:$false] %s1579_s10 }
  0xd2   : > { %s1581_s16 = scalar_lea.vmem %s1580_s10, 256  ;;  %p1582_p6 = scmp.lt.s32.totalorder %s2257_s12, %s1580_s10 }
  0xd3   : > { %p1577_p8 = pnand %p1575_p2, %p1561_p13  ;;  %p1583_p4 = scmp.lt.s32.totalorder %s1581_s16, %s1574_s21 }
  0xd5   : > { %p1578_p7 = pneg %p1577_p8  ;;  %p1584_p9 = por %p1583_p4, %p1582_p6 }
  0xd7   : > { %p1585_p3 = pnand %p1584_p9, %p1578_p7 }
  0xd9   : > { %1588 = shalt.err (!%p1585_p3)
}
  0xda   : > { %s2664_s6 = smov 4   ;;  %s2665_s29 = smov 64  }
  0xdb   : > { %s2666_s11 = smov 128   ;;  %s394_s27 = scalar_lea.vmem [#allocation8], %s2148_s25 }
  0xdc   : > { %1263 = dma.hbm_to_vmem [thread:$0]  (!%p2253_p12), %s2249_s14, 128, %s2257_s12, %s2265_s8, %s2666_s11, %s2665_s29, %s2664_s6  }
  0xdd   : > { %s402_s20 = sshll.u32 %s394_s27, 4  ;;  %s2667_s1 = sld [smem:[#allocation51_spill]]  ;;  %s403_s20 = int_to_ptr.vmem [resolvable:$true] %s402_s20 }
  0xde   : > { %s1589_s16 = scalar_lea.hbm %s2263_s3, 32  ;;  %p2668_p11 = scmp.ne.s32.totalorder %s2648_s9, 0 }
  0xdf   : > { %p1590_p13 = scmp.ne.s32.totalorder %s2263_s3, %s1589_s16  ;;  %s1594_s18 = scalar_lea.hbm %s2663_s0, 64 }
  0xe0   : > { %p1595_p12 = scmp.lt.u32.totalorder %s2263_s3, %s2663_s0  ;;  %p1596_p0 = scmp.lt.u32.totalorder %s1594_s18, %s1589_s16 }
  0xe1   : > { %p1592_p5 = pnand %p1590_p13, %p2668_p11  ;;  %p1598_p8 = scmp.lt.u32.totalorder %s1589_s16, %s2263_s3 }
  0xe2   : > { %p1597_p2 = por %p1596_p0, %p1595_p12 }
  0xe3   : > { %s2301_s10 = scalar_lea.hbm %s2667_s1, %s2151_s22  ;;  %p1593_p10 = pneg %p1592_p5 }
  0xe4   : > { %p1599_p7 = por %p1598_p8, %p1597_p2 }
  0xe6   : > { %p1600_p6 = pnand %p1599_p7, %p1593_p10 }
  0xe8   : > { %1603 = shalt.err (!%p1600_p6)
}
  0xe9   : > { %s1604_s22 = scalar_lea.vmem %s403_s20, 32  ;;  %s1859_s14 = smov [#allocation8]  }
  0xea   : > { %p1605_p4 = scmp.ne.s32.totalorder %s403_s20, %s1604_s22  ;;  %s1609_s12 = sshll.u32 %s1859_s14, 4  ;;  %s1610_s12 = int_to_ptr.vmem [resolvable:$false] %s1609_s12 }
  0xeb   : > { %s1611_s13 = scalar_lea.vmem %s1610_s12, 64  ;;  %p1612_p13 = scmp.lt.s32.totalorder %s403_s20, %s1610_s12 }
  0xec   : > { %p1607_p9 = pnand %p1605_p4, %p2668_p11  ;;  %p1613_p5 = scmp.lt.s32.totalorder %s1611_s13, %s1604_s22 }
  0xee   : > { %p1608_p3 = pneg %p1607_p9  ;;  %p1614_p1 = por %p1613_p5, %p1612_p13 }
  0xf0   : > { %p1615_p0 = pnand %p1614_p1, %p1608_p3 }
  0xf2   : > { %1618 = shalt.err (!%p1615_p0)
}
  0xf3   : > { %p2669_p12 = scmp.ne.s32.totalorder %s2646_s15, 0  ;;  %s432_s28 = scalar_lea.vmem [#allocation11], %s2148_s25 }
  0xf4   : > { %s440_s18 = sshll.u32 %s432_s28, 4  ;;  %s1229_s24 = sshll.u32 %s1841_s17, 7  ;;  %s441_s18 = int_to_ptr.vmem [resolvable:$true] %s440_s18 }
  0xf5   : > { %1269 = dma.hbm_to_vmem [thread:$0]  (!%p2669_p12), %s2263_s3, 32, %s403_s20, %s2088_s2  }
  0xf6   : > { %s2670_s6 = sld [smem:[#allocation54_spill]]  ;;  %s1619_s27 = scalar_lea.hbm %s2301_s10, 32 }
  0xf7   : > { %p1620_p1 = scmp.ne.s32.totalorder %s2301_s10, %s1619_s27  ;;  %s1624_s16 = scalar_lea.hbm %s2667_s1, 64 }
  0xf8   : > { %p1625_p8 = scmp.lt.u32.totalorder %s2301_s10, %s2667_s1  ;;  %p1626_p7 = scmp.lt.u32.totalorder %s1624_s16, %s1619_s27 }
  0xf9   : > { %p1622_p10 = pnand %p1620_p1, %p2668_p11  ;;  %p1628_p4 = scmp.lt.u32.totalorder %s1619_s27, %s2301_s10 }
  0xfa   : > { %p1627_p6 = por %p1626_p7, %p1625_p8 }
  0xfb   : > { %p1623_p2 = pneg %p1622_p10 }
  0xfc   : > { %s2326_s29 = scalar_lea.hbm %s2670_s6, %s1229_s24  ;;  %p1629_p9 = por %p1628_p4, %p1627_p6 }
  0xfe   : > { %p1630_p3 = pnand %p1629_p9, %p1623_p2 }
 0x100   : > { %1633 = shalt.err (!%p1630_p3)
}
 0x101   : > { %s1634_s25 = scalar_lea.vmem %s441_s18, 32  ;;  %s1860_s3 = smov [#allocation11]  }
 0x102   : > { %p1635_p13 = scmp.ne.s32.totalorder %s441_s18, %s1634_s25  ;;  %s1639_s20 = sshll.u32 %s1860_s3, 4  ;;  %s1640_s20 = int_to_ptr.vmem [resolvable:$false] %s1639_s20 }
 0x103   : > { %s1641_s14 = scalar_lea.vmem %s1640_s20, 64  ;;  %p1642_p1 = scmp.lt.s32.totalorder %s441_s18, %s1640_s20 }
 0x104   : > { %p1637_p5 = pnand %p1635_p13, %p2668_p11  ;;  %p1643_p10 = scmp.lt.s32.totalorder %s1641_s14, %s1634_s25 }
 0x106   : > { %p1638_p0 = pneg %p1637_p5  ;;  %p1644_p12 = por %p1643_p10, %p1642_p1 }
 0x108   : > { %p1645_p7 = pnand %p1644_p12, %p1638_p0 }
 0x10a   : > { %1648 = shalt.err (!%p1645_p7)
}
 0x10b   : > { %p2671_p8 = scmp.ne.s32.totalorder %s2646_s15, 0  ;;  %s448_s12 = scalar_lea.sflag [#allocation16], %s2137_s5 }
 0x10c   : > { %s1649_s13 = scalar_lea.hbm %s2326_s29, 2048  ;;  %s1654_s4 = scalar_lea.hbm %s2670_s6, 4096 }
 0x10d   : > { %1275 = dma.hbm_to_vmem [thread:$0]  (!%p2671_p8), %s2301_s10, 32, %s441_s18, %s2170_s7  }
 0x10e   : > { %p1650_p2 = scmp.ne.s32.totalorder %s2326_s29, %s1649_s13  ;;  %p1655_p12 = scmp.lt.u32.totalorder %s2326_s29, %s2670_s6 }
 0x10f   : > { %p1656_p9 = scmp.lt.u32.totalorder %s1654_s4, %s1649_s13  ;;  %p1658_p13 = scmp.lt.u32.totalorder %s1649_s13, %s2326_s29 }
 0x110   : > { %p1652_p6 = pnand %p1650_p2, %p2668_p11 }
 0x111   : > { %p1657_p3 = por %p1656_p9, %p1655_p12 }
 0x112   : > { %p1653_p4 = pneg %p1652_p6 }
 0x113   : > { %p1659_p5 = por %p1658_p13, %p1657_p3 }
 0x115   : > { %p1660_p0 = pnand %p1659_p5, %p1653_p4 }
 0x117   : > { %1663 = shalt.err (!%p1660_p0)
}
 0x118   : > { %s1664_s7 = scalar_lea.vmem %s2201_s30, 2048  ;;  %s1861_s10 = smov [#allocation15]  }
 0x119   : > { %p1665_p1 = scmp.ne.s32.totalorder %s2201_s30, %s1664_s7  ;;  %s1669_s18 = sshll.u32 %s1861_s10, 4  ;;  %s1670_s18 = int_to_ptr.vmem [resolvable:$false] %s1669_s18 }
 0x11a   : > { %s1671_s21 = scalar_lea.vmem %s1670_s18, 4096  ;;  %p1672_p2 = scmp.lt.s32.totalorder %s2201_s30, %s1670_s18 }
 0x11b   : > { %p1667_p10 = pnand %p1665_p1, %p2668_p11  ;;  %p1673_p6 = scmp.lt.s32.totalorder %s1671_s21, %s1664_s7 }
 0x11d   : > { %p1668_p7 = pneg %p1667_p10  ;;  %p1674_p12 = por %p1673_p6, %p1672_p2 }
 0x11f   : > { %p1675_p9 = pnand %p1674_p12, %p1668_p7 }
 0x121   : > { %1678 = shalt.err (!%p1675_p9)
}
 0x122   : > { %s2672_s26 = smov 8   ;;  %s2673_s16 = smov 256  }
 0x123   : > { %1278 = dma.hbm_to_vmem [thread:$0]  (!%p2671_p8), %s2326_s29, 2048, %s2201_s30, %s448_s12, %s2673_s16, %s2666_s11, %s2672_s26  }
 0x124   : > { %s2674_s9 = sld [smem:[#allocation37_spill]] }
 0x12a   : > { %p2675_p11 = scmp.ne.s32.totalorder %s2674_s9, 0 }
 0x12b   : > { %s2676_s22 = sld [smem:[#allocation31_spill]] (!%p2675_p11)  ;;  %p2677_p4 = scmp.ne.s32.totalorder (!%p2675_p11), %s2659_s23, 0 }
 0x12c   : > { %470 = sbr.rel (%p2675_p11) target bundleno = 850 (0x352), region = 52 }
 0x131   : > { %s472_s2 = sand.u32 (!%p2675_p11), 1, %s2676_s22  }
 0x132   : > { %s2376_s25 = sshll.u32 (!%p2675_p11), %s472_s2, 3  ;;  %s473_s3 = scalar_lea.sflag (!%p2675_p11), [#allocation4], %s472_s2 }
 0x133   : > { %s476_s20 = scalar_lea.vmem [#allocation3], %s2376_s25 }
 0x134   : > { %1764 = dma.done.wait (%p2677_p4), %s473_s3, 128  }
 0x135   : > { %1766 = vsyncadd (%p2677_p4), %s473_s3, 4294967168  ;;  %s2678_s5 = sld [smem:[#allocation28_spill]]  ;;  %s481_s30 = sand.u32 1, %s1985_s19  }
 0x136   : > { %s2679_s15 = sld [smem:[#allocation40_spill]]  ;;  %s482_s14 = scalar_lea.sflag [#allocation7], %s481_s30 }
 0x13b   : > { %s483_s11 = sand.u32 1, %s2678_s5  }
 0x13c   : > { %s1192_s29 = sshll.u32 %s483_s11, 6  ;;  %p2680_p8 = scmp.ne.s32.totalorder %s2679_s15, 0 }
 0x13d   : > { %s2385_s12 = scalar_lea.vmem [#allocation6], %s1192_s29 }
 0x13e   : > { %1768 = dma.done.wait (%p2680_p8), %s482_s14, 1024  }
 0x13f   : > { %1770 = vsyncadd (%p2680_p8), %s482_s14, 4294966272  ;;  %s2681_s13 = sld [smem:[#allocation26_spill]]  ;;  %s2682_s28 = sld [smem:[#allocation43_spill]] }
 0x145   : > { %s2392_s24 = sand.u32 1, %s2681_s13   ;;  %p2683_p3 = scmp.ne.s32.totalorder %s2682_s28, 0 }
 0x146   : > { %s2395_s23 = sshll.u32 %s2392_s24, 1 }
 0x147   : > { %s494_s4 = scalar_lea.vmem [#allocation8], %s2395_s23 }
 0x148   : > { %1772 = dma.done.wait (%p2683_p3), %s482_s14, 32  }
 0x149   : > { %1774 = vsyncadd (%p2683_p3), %s482_s14, 4294967264  ;;  %s500_s8 = scalar_lea.sflag [#allocation10], %s481_s30  ;;  %s503_s27 = scalar_lea.vmem [#allocation9], %s2395_s23 }
 0x14a   : > { %1776 = dma.done.wait (%p2683_p3), %s500_s8, 64  }
 0x14b   : > { %1778 = vsyncadd (%p2683_p3), %s500_s8, 4294967232  ;;  %s512_s7 = scalar_lea.vmem [#allocation11], %s2395_s23  ;;  %p2684_p13 = scmp.eq.s32.totalorder %s1985_s19, 0 }
 0x14d   : > { %1780 = dma.done.wait (%p2684_p13), [#allocation13], 384   ;;  %p2685_p5 = pmov %p2684_p13 }
 0x14e   : > { %s1198_s10 = sshll.u32 %s2392_s24, 7  ;;  %s526_s18 = scalar_lea.sflag [#allocation16], %s2392_s24 }
 0x14f   : > { %1782 = vsyncadd (%p2685_p5), [#allocation13], 4294966912  ;;  %s2414_s21 = scalar_lea.vmem [#allocation15], %s1198_s10 }
 0x150   : > { %1784 = dma.done.wait (%p2683_p3), %s526_s18, 2048  }
 0x151   : > { %1786 = vsyncadd (%p2683_p3), %s526_s18, 4294965248  ;;  %s1199_s26 = sshll.u32 %s2392_s24, 5  ;;  %s2686_s9 = sld [smem:[#allocation33_spill]] }
 0x152   : > { %s2421_s16 = scalar_lea.vmem [#allocation17], %s1199_s26 }
 0x157   : > { %p1200_p0 = scmp.ne.s32.totalorder %s2686_s9, 0 }
 0x158   : > { %v1862_v0 = vmov (!%p1200_p0), 0.0  }
 0x159   : > { %602 = sbr.rel (%p1200_p0) target bundleno = 352 (0x160), region = 88  ;;  %603 = vst [vmem:[#allocation2] sm:$0xff] (!%p1200_p0), %v1862_v0  ;;  %604 = vst [vmem:[#allocation2 + $0x8] sm:$0xff] (!%p1200_p0), %v1862_v0 }
 0x15a   : > { %605 = vst [vmem:[#allocation2 + $0x10] sm:$0xff] (!%p1200_p0), %v1862_v0  ;;  %606 = vst [vmem:[#allocation2 + $0x18] sm:$0xff] (!%p1200_p0), %v1862_v0 }
 0x160 PF: > { %v614_v1 = vld [vmem:[%s2385_s12 + $0x8] sm:$0xff]  ;;  %v613_v2 = vld [vmem:[%s2385_s12] sm:$0xff]  ;;  %v1863_v6 = vmov 0   ;;  %v616_v7 = vld [vmem:[%s2385_s12 + $0x18] sm:$0xff]  ;;  %s2687_s19 = sld [smem:[#allocation33_spill]] }
 0x161   : > { %v622_v3 = vunpack.c.l.s8.bf16 %v614_v1  ;;  %v624_v4 = vunpack.c.h.s8.bf16 %v614_v1  ;;  %v621_v5 = vunpack.c.l.s8.bf16 %v613_v2  ;;  %675 = vmatprep.mubr.bf16.mxu0 %v1863_v6  ;;  %v623_v8 = vunpack.c.h.s8.bf16 %v613_v2  ;;  %v615_v10 = vld [vmem:[%s2385_s12 + $0x10] sm:$0xff]  ;;  %v618_v13 = vld [vmem:[%s2385_s12 + $0x28] sm:$0xff]  ;;  %v617_v16 = vld [vmem:[%s2385_s12 + $0x20] sm:$0xff] }
 0x162   : > { %v626_v9 = vunpack.c.l.s8.bf16 %v616_v7  ;;  %v625_v11 = vunpack.c.l.s8.bf16 %v615_v10  ;;  %v628_v12 = vunpack.c.h.s8.bf16 %v616_v7  ;;  %v627_v14 = vunpack.c.h.s8.bf16 %v615_v10  ;;  %v620_v19 = vld [vmem:[%s2385_s12 + $0x38] sm:$0xff]  ;;  %v619_v22 = vld [vmem:[%s2385_s12 + $0x30] sm:$0xff]  ;;  %v609_v30 = vld [vmem:[#allocation2 + $0x10] sm:$0xff] }
 0x163   : > { %643 = vmatprep.subr.bf16.mxu0 %v622_v3  ;;  %v630_v15 = vunpack.c.l.s8.bf16 %v618_v13  ;;  %v629_v17 = vunpack.c.l.s8.bf16 %v617_v16  ;;  %v632_v18 = vunpack.c.h.s8.bf16 %v618_v13  ;;  %v631_v20 = vunpack.c.h.s8.bf16 %v617_v16  ;;  %v1416_v26 = vld [vmem:[%s476_s20] sm:$0xff]   ;;  %v610_v33 = vld [vmem:[#allocation2 + $0x18] sm:$0xff] }
 0x164   : > { %644 = vmatpush1.bf16.msra.mxu0 %v621_v5  ;;  %v634_v21 = vunpack.c.l.s8.bf16 %v620_v19  ;;  %v633_v23 = vunpack.c.l.s8.bf16 %v619_v22  ;;  %v636_v24 = vunpack.c.h.s8.bf16 %v620_v19  ;;  %v635_v25 = vunpack.c.h.s8.bf16 %v619_v22  ;;  %v607_v27 = vld [vmem:[#allocation2] sm:$0xff]  ;;  %v608_v28 = vld [vmem:[#allocation2 + $0x8] sm:$0xff] }
 0x165   : > { %645 = vmatprep.subr.bf16.mxu0 %v624_v4 }
 0x166   : > { %p1202_p1 = scmp.ne.s32.totalorder %s2687_s19, 1 }
 0x167   : > { %v1418_v39 = vld [vmem:[%s2414_s21 + $0x4] ss:$8 sps:$4 sm:$0xff] (!%p1202_p1)   ;;  %v1420_v40 = vld [vmem:[%s2414_s21] ss:$8 sps:$4 sm:$0xff] (!%p1202_p1)   ;;  %v1864_v41 = vmov (!%p1202_p1), 0   ;;  %v718_v48 = vld [vmem:[#allocation14] sm:$0xff] (!%p1202_p1)  ;;  %v704_v59 = vlaneseq (!%p1202_p1) }
 0x168   : > { %646 = vmatpush1.bf16.msra.mxu0 %v623_v8  ;;  %1417 = vset.pattern.permute.xlu0 (!%p1202_p1), %v1864_v41  ;;  %v1421_v42 = vld [vmem:[%s2414_s21 + $0x14] ss:$8 sps:$4 sm:$0xff] (!%p1202_p1)   ;;  %v1423_v43 = vld [vmem:[%s2414_s21 + $0x10] ss:$8 sps:$4 sm:$0xff] (!%p1202_p1)   ;;  %v1424_v44 = vld [vmem:[%s2414_s21 + $0x24] ss:$8 sps:$4 sm:$0xff] (!%p1202_p1)  }
 0x169   : > { %647 = vmatprep.subr.bf16.mxu0 %v626_v9  ;;  %v1426_v45 = vld [vmem:[%s2414_s21 + $0x20] ss:$8 sps:$4 sm:$0xff] (!%p1202_p1)   ;;  %v1427_v46 = vld [vmem:[%s2414_s21 + $0x34] ss:$8 sps:$4 sm:$0xff] (!%p1202_p1)   ;;  %v1429_v47 = vld [vmem:[%s2414_s21 + $0x30] ss:$8 sps:$4 sm:$0xff] (!%p1202_p1)   ;;  %723 = vperm.xlu0 (!%p1202_p1), %1417, %v718_v48  }
 0x16a   : > { %v1430_v49 = vld [vmem:[%s2414_s21 + $0x44] ss:$8 sps:$4 sm:$0xff] (!%p1202_p1)   ;;  %v719_v50 = vld [vmem:[#allocation14 + $0x8] sm:$0xff] (!%p1202_p1)  ;;  %v1432_v51 = vld [vmem:[%s2414_s21 + $0x40] ss:$8 sps:$4 sm:$0xff] (!%p1202_p1)   ;;  %v705_v60 = vshrl.u32 (!%p1202_p1), %v704_v59, 7 }
 0x16b   : > { %v1433_v52 = vld [vmem:[%s2414_s21 + $0x54] ss:$8 sps:$4 sm:$0xff] (!%p1202_p1)   ;;  %v1435_v53 = vld [vmem:[%s2414_s21 + $0x50] ss:$8 sps:$4 sm:$0xff] (!%p1202_p1)   ;;  %v1436_v54 = vld [vmem:[%s2414_s21 + $0x64] ss:$8 sps:$4 sm:$0xff] (!%p1202_p1)  }
 0x16c   : > { %648 = vmatpush1.bf16.msra.mxu0 %v625_v11  ;;  %v1438_v55 = vld [vmem:[%s2414_s21 + $0x60] ss:$8 sps:$4 sm:$0xff] (!%p1202_p1)   ;;  %v1439_v56 = vld [vmem:[%s2414_s21 + $0x74] ss:$8 sps:$4 sm:$0xff] (!%p1202_p1)   ;;  %v1441_v57 = vld [vmem:[%s2414_s21 + $0x70] ss:$8 sps:$4 sm:$0xff] (!%p1202_p1)  }
 0x16d   : > { %649 = vmatprep.subr.bf16.mxu0 %v628_v12  ;;  %728 = vperm.xlu0 (!%p1202_p1), %1417, %v719_v50   ;;  %v1442_v58 = vld [vmem:[#allocation12] sm:$0xff] (!%p1202_p1)   ;;  %v706_v61 = vsub.s32 (!%p1202_p1), 0, %v705_v60  ;;  %v720_v62 = vld [vmem:[%s503_s27] sm:$0x3] (!%p1202_p1)  ;;  %v702_v63 = vld [vmem:[%s494_s4] sm:$0x3] (!%p1202_p1) }
 0x16e   : > { %v710_v1 = vsub.s32 (!%p1202_p1), 1, %v705_v60 }
 0x16f   : > { %v735_v2 = vrot.slane (!%p1202_p1), %v720_v62, %v706_v61  ;;  %v707_v3 = vrot.slane (!%p1202_p1), %v702_v63, %v706_v61 }
 0x170   : > { %650 = vmatpush1.bf16.msra.mxu0 %v627_v14  ;;  %v739_v5 = vrot.slane (!%p1202_p1), %v720_v62, %v710_v1  ;;  %v711_v6 = vrot.slane (!%p1202_p1), %v702_v63, %v710_v1  ;;  %v901_v14 = vld [vmem:[%s512_s7] sm:$0x3] (!%p1202_p1) }
 0x171   : > { %651 = vmatprep.subr.bf16.mxu0 %v630_v15 }
 0x174   : > { %652 = vmatpush1.bf16.msra.mxu0 %v629_v17 }
 0x175   : > { %653 = vmatprep.subr.bf16.mxu0 %v632_v18 }
 0x178   : > { %654 = vmatpush1.bf16.msra.mxu0 %v631_v20 }
 0x179   : > { %655 = vmatprep.subr.bf16.mxu0 %v634_v21  ;;  %v906_v21 = vrot.slane (!%p1202_p1), %v901_v14, %v706_v61 }
 0x17c   : > { %656 = vmatpush1.bf16.msra.mxu0 %v633_v23 }
 0x17d   : > { %657 = vmatprep.subr.bf16.mxu0 %v636_v24  ;;  %v910_v24 = vrot.slane (!%p1202_p1), %v901_v14, %v710_v1 }
 0x180   : > { %658 = vmatpush1.bf16.msra.mxu0 %v635_v25 }
 0x181   : > { %854 = vmatprep.subr.bf16.mxu0 (!%p1202_p1), %v1418_v39 }
 0x183   : > { %676 = vmatmul.mubr.bf16.vlgmr.msra.gmra.mrb[0].mxu0 %v1416_v26 }
 0x184   : > { %886 = vmatprep.mubr.bf16.mxu0 (!%p1202_p1), %v1864_v41  ;;  %855 = vmatpush1.bf16.msra.mxu0 (!%p1202_p1), %v1420_v40 }
 0x185   : > { %856 = vmatprep.subr.bf16.mxu0 (!%p1202_p1), %v1421_v42 }
 0x188   : > { %857 = vmatpush1.bf16.msra.mxu0 (!%p1202_p1), %v1423_v43 }
 0x189   : > { %858 = vmatprep.subr.bf16.mxu0 (!%p1202_p1), %v1424_v44 }
 0x18c   : > { %859 = vmatpush1.bf16.msra.mxu0 (!%p1202_p1), %v1426_v45 }
 0x18d   : > { %860 = vmatprep.subr.bf16.mxu0 (!%p1202_p1), %v1427_v46 }
 0x190   : > { %861 = vmatpush1.bf16.msra.mxu0 (!%p1202_p1), %v1429_v47 }
 0x191   : > { %862 = vmatprep.subr.bf16.mxu0 (!%p1202_p1), %v1430_v49 }
 0x194   : > { %863 = vmatpush1.bf16.msra.mxu0 (!%p1202_p1), %v1432_v51 }
 0x195   : > { %864 = vmatprep.subr.bf16.mxu0 (!%p1202_p1), %v1433_v52 }
 0x198   : > { %865 = vmatpush1.bf16.msra.mxu0 (!%p1202_p1), %v1435_v53 }
 0x199   : > { %866 = vmatprep.subr.bf16.mxu0 (!%p1202_p1), %v1436_v54 }
 0x19c   : > { %867 = vmatpush1.bf16.msra.mxu0 (!%p1202_p1), %v1438_v55 }
 0x19d   : > { %868 = vmatprep.subr.bf16.mxu0 (!%p1202_p1), %v1439_v56 }
 0x1a0   : > { %869 = vmatpush1.bf16.msra.mxu0 (!%p1202_p1), %v1441_v57 }
 0x1e8   : > { %v724_v0 = vpop.permute.xlu0 (!%p1202_p1), %723 }
 0x1e9   : > { %v742_v7 = vmul.f32 (!%p1202_p1), %v735_v2, %v724_v0  ;;  %v743_v13 = vmul.f32 (!%p1202_p1), %v739_v5, %v724_v0 }
 0x1ec   : > { %v729_v10 = vpop.permute.xlu0 (!%p1202_p1), %728 }
 0x1ed   : > { %v744_v16 = vmul.f32 (!%p1202_p1), %v735_v2, %v729_v10  ;;  %v745_v19 = vmul.f32 (!%p1202_p1), %v739_v5, %v729_v10 }
 0x256   : > { %v677_v29 = vpop.f32.mrb[0].mxu0  ;;  %697 = sbr.rel (%p1202_p1) target bundleno = 821 (0x335), region = 92 }
 0x257   : > { %v686_v31 = vadd.f32 %v677_v29, %v607_v27  ;;  %v679_v32 = vpop.f32.mrb[1].mxu0 }
 0x258   : > { %v687_v34 = vadd.f32 %v679_v32, %v608_v28  ;;  %v681_v35 = vpop.f32.mrb[2].mxu0 }
 0x259   : > { %690 = vst [vmem:[#allocation2] sm:$0xff] %v686_v31  ;;  %v688_v36 = vadd.f32 %v681_v35, %v609_v30  ;;  %v683_v37 = vpop.f32.mrb[3].mxu0  ;;  %887 = vmatmul.mubr.bf16.vlgmr.msra.gmra.mrb[0].mxu0 (!%p1202_p1), %v1442_v58 }
 0x25a   : > { %691 = vst [vmem:[#allocation2 + $0x8] sm:$0xff] %v687_v34  ;;  %v689_v38 = vadd.f32 %v683_v37, %v610_v33 }
 0x25b   : > { %692 = vst [vmem:[#allocation2 + $0x10] sm:$0xff] %v688_v36 }
 0x25c   : > { %693 = vst [vmem:[#allocation2 + $0x18] sm:$0xff] %v689_v38 }
 0x260   : > { %v698_v4 = vld [vmem:[#allocation2] sm:$0xff] }
 0x261   : > { %v714_v8 = vmul.f32 %v707_v3, %v698_v4  ;;  %v699_v9 = vld [vmem:[#allocation2 + $0x8] sm:$0xff] }
 0x262   : > { %v700_v11 = vld [vmem:[#allocation2 + $0x10] sm:$0xff]  ;;  %v715_v15 = vmul.f32 %v711_v6, %v699_v9 }
 0x263   : > { %v701_v12 = vld [vmem:[#allocation2 + $0x18] sm:$0xff]  ;;  %v746_v17 = vsub.f32 %v714_v8, %v742_v7  ;;  %v716_v18 = vmul.f32 %v707_v3, %v700_v11 }
 0x264   : > { %v717_v20 = vmul.f32 %v711_v6, %v701_v12  ;;  %v747_v23 = vsub.f32 %v715_v15, %v743_v13 }
 0x265   : > { %v748_v27 = vsub.f32 %v716_v18, %v744_v16 }
 0x266   : > { %v749_v30 = vsub.f32 %v717_v20, %v745_v19 }
 0x32c   : > { %v888_v22 = vpop.f32.mrb[0].mxu0 }
 0x32d   : > { %v897_v25 = vadd.f32 %v888_v22, %v746_v17  ;;  %v890_v26 = vpop.f32.mrb[1].mxu0 }
 0x32e   : > { %v898_v28 = vadd.f32 %v890_v26, %v747_v23  ;;  %v892_v29 = vpop.f32.mrb[2].mxu0 }
 0x32f   : > { %v913_v31 = vadd.f32 %v906_v21, %v897_v25  ;;  %v899_v32 = vadd.f32 %v892_v29, %v748_v27  ;;  %v894_v33 = vpop.f32.mrb[3].mxu0 }
 0x330   : > { %v914_v34 = vadd.f32 %v910_v24, %v898_v28  ;;  %v900_v35 = vadd.f32 %v894_v33, %v749_v30 }
 0x331   : > { %917 = vst [vmem:[%s2421_s16] sm:$0xff] %v913_v31  ;;  %v915_v36 = vadd.f32 %v906_v21, %v899_v32 }
 0x332   : > { %918 = vst [vmem:[%s2421_s16 + $0x8] sm:$0xff] %v914_v34  ;;  %v916_v37 = vadd.f32 %v910_v24, %v900_v35 }
 0x333   : > { %919 = vst [vmem:[%s2421_s16 + $0x10] sm:$0xff] %v915_v36 }
 0x334   : > { %920 = vst [vmem:[%s2421_s16 + $0x18] sm:$0xff] %v916_v37 }
 0x335 PF: > { %s2688_s22 = sld [smem:[#allocation34_spill]]  ;;  %s2689_s2 = sld [smem:[#allocation44_spill]] }
 0x336   : > { %s2690_s5 = sld [smem:[#allocation55_spill]]  ;;  %s938_s30 = sshll.u32 %s2421_s16, 4  ;;  %s2468_s30 = int_to_ptr.vmem [resolvable:$true] %s938_s30 }
 0x337   : > { %s922_s11 = scalar_lea.sflag [#allocation5], %s2392_s24  ;;  %s1679_s29 = scalar_lea.vmem %s2468_s30, 512 }
 0x338   : > { %p1680_p10 = scmp.ne.s32.totalorder %s2468_s30, %s1679_s29  ;;  %s1865_s14 = smov [#allocation17]  }
 0x339   : > { %s1683_s12 = sshll.u32 %s1865_s14, 4  ;;  %s1684_s12 = int_to_ptr.vmem [resolvable:$false] %s1683_s12 }
 0x33a   : > { %s1685_s13 = scalar_lea.vmem %s1684_s12, 1024  ;;  %p1686_p12 = scmp.lt.s32.totalorder %s2468_s30, %s1684_s12 }
 0x33b   : > { %s1230_s25 = sshll.u32 %s2688_s22, 8  ;;  %p2691_p7 = scmp.ne.s32.totalorder %s2689_s2, 0 }
 0x33c   : > { %s2465_s15 = scalar_lea.hbm %s2690_s5, %s1230_s25  ;;  %p1687_p9 = scmp.lt.s32.totalorder %s1685_s13, %s1679_s29 }
 0x33d   : > { %p1681_p2 = pnand %p1680_p10, %p2691_p7 }
 0x33e   : > { %p1688_p11 = por %p1687_p9, %p1686_p12 }
 0x33f   : > { %p1682_p6 = pneg %p1681_p2 }
 0x341   : > { %p1689_p4 = pnand %p1688_p11, %p1682_p6 }
 0x343   : > { %1692 = shalt.err (!%p1689_p4)
}
 0x344   : > { %s1693_s28 = scalar_lea.hbm %s2465_s15, 512  ;;  %s1697_s8 = scalar_lea.hbm %s2690_s5, 1024 }
 0x345   : > { %p1694_p8 = scmp.ne.s32.totalorder %s2465_s15, %s1693_s28  ;;  %p1698_p5 = scmp.lt.u32.totalorder %s2465_s15, %s2690_s5 }
 0x346   : > { %p1699_p0 = scmp.lt.u32.totalorder %s1697_s8, %s1693_s28  ;;  %p1701_p10 = scmp.lt.u32.totalorder %s1693_s28, %s2465_s15 }
 0x347   : > { %p1695_p3 = pnand %p1694_p8, %p2691_p7 }
 0x348   : > { %p1700_p1 = por %p1699_p0, %p1698_p5 }
 0x349   : > { %p1696_p13 = pneg %p1695_p3 }
 0x34a   : > { %p1702_p2 = por %p1701_p10, %p1700_p1 }
 0x34c   : > { %p1703_p6 = pnand %p1702_p2, %p1696_p13 }
 0x34e   : > { %1706 = shalt.err (!%p1703_p6)
}
 0x34f   : > { %s1866_s10 = smov 256   ;;  %s1867_s18 = smov 512  }
 0x350   : > { %s1868_s21 = smov 16  }
 0x351   : > { %1251 = dma.vmem_to_hbm [thread:$0]  (%p2691_p7), %s2468_s30, 512, %s2465_s15, %s922_s11, %s1866_s10, %s1867_s18, %s1868_s21  }
 0x352 PF: > { %s2692_s26 = sld [smem:[#allocation36_spill]]  ;;  %s2693_s16 = sld [smem:[#allocation25_spill]] }
 0x353   : > { %s2694_s9 = sld [smem:[#allocation45_spill]] }
 0x358   : > { %p1288_p12 = scmp.ge.s32.totalorder %s2692_s26, 2  ;;  %s953_s19 = sand.u32 1, %s2693_s16  }
 0x359   : > { %p2695_p9 = scmp.ne.s32.totalorder %s2694_s9, 0  ;;  %s954_s22 = scalar_lea.sflag [#allocation5], %s953_s19 }
 0x35b   : > { %p1280_p11 = pnand %p1288_p12, %p2695_p9 }
 0x35d   : > { %1788 = dma.done.wait (!%p1280_p11), %s954_s22, 512  }
 0x35e   : > { %1790 = vsyncadd (!%p1280_p11), %s954_s22, 4294966784  ;;  %s34_s18 = sadd.s32 1, %s2692_s26   ;;  %s2697_s27 = sld [smem:[#allocation26_spill]] }
 0x35f   : > { %p2499_p4 = scmp.ge.s32.totalorder %s34_s18, 6   ;;  %s2698_s28 = sld [smem:[#allocation27_spill]] }
 0x360   : > { %s2699_s29 = sld [smem:[#allocation42_spill]]  ;;  %s2701_s9 = sld [smem:[#allocation29_spill]] }
 0x361   : > { %s2700_s30 = sld [smem:[#allocation28_spill]]  ;;  %s2702_s10 = sld [smem:[#allocation41_spill]] }
 0x362   : > { %s2703_s11 = sld [smem:[#allocation31_spill]]  ;;  %s2704_s12 = sld [smem:[#allocation32_spill]] }
 0x363   : > { %s2705_s13 = sld [smem:[#allocation46_spill]]  ;;  %s2706_s14 = sld [smem:[#allocation35_spill]] }
 0x364   : > { %s2707_s16 = sld [smem:[#allocation38_spill]]  ;;  %s2708_s24 = sld [smem:[#allocation39_spill]] }
 0x365   : > { %s2709_s15 = smov %s1841_s17  ;;  %33 = sbr.rel (!%p2499_p4) target bundleno = 27 (0x1b), region = 176 }
 0x36a   : > { %s2710_s17 = smov %s2708_s24 }
 0x36c   :  { %959 = vsyncpa [#allocation4], 1 }
 0x36d   :  { %961 = vsyncpa [#allocation4 + $0x1], 1 }
 0x36e   :  { %962 = vsyncpa [#allocation7], 1 }
 0x36f   :  { %964 = vsyncpa [#allocation7 + $0x1], 1 }
 0x370   :  { %965 = vsyncpa [#allocation10], 1 }
 0x371   :  { %967 = vsyncpa [#allocation10 + $0x1], 1 }
 0x372   :  { %968 = vsyncpa [#allocation13], 1 }
 0x373   :  { %969 = vsyncpa [#allocation16], 1 }
 0x374   :  { %971 = vsyncpa [#allocation16 + $0x1], 1 }
 0x375   :  { %972 = vsyncpa [#allocation5], 1 }
 0x376   :  { %974 = vsyncpa [#allocation5 + $0x1], 1 }

</bundles_post_ra>
